<compile_context>
chip_gen: v5e
topology: v5e:2x2
jax: 0.10.0
libtpu: 0.0.40
codegen_flags: <defaults>
</compile_context>

<pallas_src>
import numpy as np
import jax
import jax.numpy as jnp
from jax.experimental import pallas as pl
from jax.experimental.pallas import tpu as pltpu


# ----------------------------- Pallas kernel ------------------------------- #

def _make_fused_net_kernel(num_stages):
    """h = x; for each stage: h = h @ W + b; ReLU on all but the last stage."""
    def kernel(*refs):
        x_ref, o_ref = refs[0], refs[-1]
        h = x_ref[...]
        for s in range(num_stages):
            w_ref = refs[1 + 2 * s]
            b_ref = refs[2 + 2 * s]
            h = jnp.dot(h, w_ref[...], preferred_element_type=jnp.float32) + b_ref[...]
            if s < num_stages - 1:
                h = jnp.maximum(h, 0.0)
        o_ref[...] = h.astype(o_ref.dtype)
    return kernel


def _full_spec(shape):
    ndim = len(shape)
    return pl.BlockSpec(shape, lambda i, _n=ndim: (0,) * _n)


def net_forward_pallas(x_nchw, prep):
    """x_nchw: (B, 3, 8, 8) float32. prep: {'stages': [(W, bias_row), ...]}."""
    B = x_nchw.shape[0]
    x = x_nchw.reshape(B, -1).astype(jnp.float32)    # NCHW flatten, free (no data movement)
    stages = prep["stages"]
    num_stages = len(stages)

    operands = [x]
    for w, b in stages:
        operands.append(w)
        operands.append(b)
    n_out = stages[-1][0].shape[1]

    return pl.pallas_call(
        _make_fused_net_kernel(num_stages),
        out_shape=jax.ShapeDtypeStruct((B, n_out), jnp.float32),
        grid=(1,),
        in_specs=[_full_spec(op.shape) for op in operands],
        out_specs=_full_spec((B, n_out)),
        compiler_params=pltpu.CompilerParams(
            dimension_semantics=("arbitrary",)),
    )(*operands)


# ------------------------- parameter preparation ---------------------------- #

def conv3x3_as_dense(w_oihw, H, W, in_layout):
    """Fold a 3x3 pad=1 conv into a dense matrix.

    Rows: per-batch flattened input; 'CHW' order (c*HW + h*W + w) or 'HWC'
    order (hw*Cin + c).  Columns: per-batch flattened output in HWC order
    (hw*Cout + co)."""
    Cout, Cin, KH, KW = w_oihw.shape
    w = np.asarray(w_oihw, np.float32)
    HW = H * W
    A = np.zeros((Cin * HW, HW * Cout), np.float32)
    for ho in range(H):
        for wo in range(W):
            ocol = (ho * W + wo) * Cout
            for kh in range(KH):
                hi = ho + kh - 1
                if hi < 0 or hi >= H:
                    continue
                for kw in range(KW):
                    wi = wo + kw - 1
                    if wi < 0 or wi >= W:
                        continue
                    ihw = hi * W + wi
                    for ci in range(Cin):
                        r = ci * HW + ihw if in_layout == "CHW" else ihw * Cin + ci
                        A[r, ocol:ocol + Cout] = w[:, ci, kh, kw]
    return A


def prepare_params(params, H=8, W=8, lane=128):
    """Fold convs, BN affines, biases and the fc1 flatten permutation into a
    list of (weight, bias_row) stages consumed by the fused kernel."""
    HW = H * W
    stages = []

    # conv layers: dense conv matrix, BN scale folded into columns,
    # (scale*bias + shift) as the per-column bias row.
    for idx, layer in enumerate(params["conv"]):
        w = np.asarray(layer["w"], np.float32)            # (Cout, Cin, 3, 3)
        Cout = w.shape[0]
        layout = "CHW" if idx == 0 else "HWC"             # first layer eats the NCHW flatten
        A = conv3x3_as_dense(w, H, W, layout)             # (Cin*HW, HW*Cout)
        scale = np.asarray(layer["bn_scale"], np.float32)
        shift = np.asarray(layer["bn_shift"], np.float32)
        b = np.asarray(layer["b"], np.float32)
        scale_col = np.tile(scale, HW)                    # column j -> scale[j % Cout]
        bias_col = np.tile(scale * b + shift, HW)
        stages.append((jnp.asarray(A * scale_col[None, :]),
                       jnp.asarray(bias_col[None, :])))

    # fc1: permute input dim from torch's NCHW flatten (c*HW+hw) to our HWC
    # flatten (hw*C+c); zero-pad the output dim (neurons) up to a lane multiple.
    C_last = params["conv"][-1]["w"].shape[0]
    Wfc1 = np.asarray(params["fc1"]["w"], np.float32)     # (neurons, C_last*HW)
    neurons = Wfc1.shape[0]
    W1p = Wfc1.reshape(neurons, C_last, HW).transpose(2, 1, 0).reshape(HW * C_last, neurons)
    npad = -(-neurons // lane) * lane
    W1pad = np.zeros((HW * C_last, npad), np.float32)
    W1pad[:, :neurons] = W1p
    b1pad = np.zeros((npad,), np.float32)
    b1pad[:neurons] = np.asarray(params["fc1"]["b"], np.float32)
    stages.append((jnp.asarray(W1pad), jnp.asarray(b1pad[None, :])))
    # TODO(synk): nn.Dropout(drop_fc1) is identity in eval mode; training-mode stochastic drop not implemented.

    # fc2: zero-padded rows match fc1's padded neurons; logits stay 10-wide.
    Wfc2 = np.asarray(params["fc2"]["w"], np.float32)     # (10, neurons)
    W2pad = np.zeros((npad, Wfc2.shape[0]), np.float32)
    W2pad[:neurons, :] = Wfc2.T
    b2 = np.asarray(params["fc2"]["b"], np.float32)
    stages.append((jnp.asarray(W2pad), jnp.asarray(b2[None, :])))

    return {"stages": stages}


# --------------------------- parameter setup ------------------------------- #

def init_params(key, num_filters, num_neurons):
    params = {"conv": []}
    in_c = 3
    eps = 1e-5
    for cout in num_filters:
        key, k1, k2, k3, k4 = jax.random.split(key, 5)
        w = 0.1 * jax.random.normal(k1, (cout, in_c, 3, 3), jnp.float32)
        b = 0.1 * jax.random.normal(k2, (cout,), jnp.float32)
        gamma = 1.0 + 0.1 * jax.random.normal(k3, (cout,), jnp.float32)
        beta = 0.1 * jax.random.normal(k4, (cout,), jnp.float32)
        running_mean = jnp.zeros((cout,), jnp.float32)
        running_var = jnp.ones((cout,), jnp.float32)
        scale = gamma / jnp.sqrt(running_var + eps)
        shift = beta - running_mean * scale
        params["conv"].append({"w": w, "b": b, "bn_scale": scale, "bn_shift": shift})
        in_c = cout
    in_features = num_filters[-1] * 8 * 8
    key, k1, k2, k3, k4 = jax.random.split(key, 5)
    params["fc1"] = {"w": 0.05 * jax.random.normal(k1, (num_neurons, in_features), jnp.float32),
                     "b": 0.05 * jax.random.normal(k2, (num_neurons,), jnp.float32)}
    params["fc2"] = {"w": 0.05 * jax.random.normal(k3, (10, num_neurons), jnp.float32),
                     "b": 0.05 * jax.random.normal(k4, (10,), jnp.float32)}
    return params


# ------------------------ pure-JAX reference check -------------------------- #

def ref_forward(x_nchw, params):
    x = x_nchw.astype(jnp.float32)
    for layer in params["conv"]:
        x = jax.lax.conv_general_dilated(
            x, layer["w"], window_strides=(1, 1), padding="SAME",
            dimension_numbers=("NCHW", "OIHW", "NCHW"))
        x = x + layer["b"][None, :, None, None]
        x = x * layer["bn_scale"][None, :, None, None] + layer["bn_shift"][None, :, None, None]
        x = jnp.maximum(x, 0.0)
    x = x.reshape(x.shape[0], -1)
    x = jnp.maximum(x @ params["fc1"]["w"].T + params["fc1"]["b"], 0.0)
    x = x @ params["fc2"]["w"].T + params["fc2"]["b"]
    return x


# --------------------------------- main ------------------------------------ #

if __name__ == "__main__":
    # Architecture hyperparameters (trial choices): no pooling in the module, so
    # fc1.in_features = num_filters[-1] * 8 * 8 forces an 8x8 spatial input.
    num_conv_layers = 2
    num_filters = [4, 8]
    num_neurons = 32

    key = jax.random.PRNGKey(0)
    key, pkey, xkey = jax.random.split(key, 3)
    params = init_params(pkey, num_filters, num_neurons)
    prep = prepare_params(params, H=8, W=8)

    x = jax.random.normal(xkey, (2, 3, 8, 8), jnp.float32)   # NCHW, like PyTorch

    fwd = jax.jit(net_forward_pallas)
    out = jax.block_until_ready(fwd(x, prep))

    ref = jax.block_until_ready(ref_forward(x, params))
    assert out.shape == (2, 10), out.shape
    assert jnp.allclose(out, ref, atol=1e-4, rtol=1e-4), float(jnp.max(jnp.abs(out - ref)))

    print("KERNEL_OK")
</pallas_src>

<mosaic_0001>
module attributes {stable_mosaic.version = 11 : i64} {
  func.func @kernel(%arg0: i32, %arg1: memref<2x192xf32, #tpu.memory_space<vmem>>, %arg2: memref<192x256xf32, #tpu.memory_space<vmem>>, %arg3: memref<1x256xf32, #tpu.memory_space<vmem>>, %arg4: memref<256x512xf32, #tpu.memory_space<vmem>>, %arg5: memref<1x512xf32, #tpu.memory_space<vmem>>, %arg6: memref<512x128xf32, #tpu.memory_space<vmem>>, %arg7: memref<1x128xf32, #tpu.memory_space<vmem>>, %arg8: memref<128x10xf32, #tpu.memory_space<vmem>>, %arg9: memref<1x10xf32, #tpu.memory_space<vmem>>, %arg10: memref<2x10xf32, #tpu.memory_space<vmem>>) attributes {dimension_semantics = [#tpu.dimension_semantics<arbitrary>], iteration_bounds = array<i64: 1>, scalar_prefetch = 0 : i64, scratch_operands = 0 : i64, tpu.core_type = #tpu.core_type<tc>, window_params = [{pipeline_mode = #tpu.pipeline_mode<synchronous>, transform_indices = @transform_0, window_bounds = array<i64: 2, 192>}, {pipeline_mode = #tpu.pipeline_mode<synchronous>, transform_indices = @transform_1, window_bounds = array<i64: 192, 256>}, {pipeline_mode = #tpu.pipeline_mode<synchronous>, transform_indices = @transform_2, window_bounds = array<i64: 1, 256>}, {pipeline_mode = #tpu.pipeline_mode<synchronous>, transform_indices = @transform_3, window_bounds = array<i64: 256, 512>}, {pipeline_mode = #tpu.pipeline_mode<synchronous>, transform_indices = @transform_4, window_bounds = array<i64: 1, 512>}, {pipeline_mode = #tpu.pipeline_mode<synchronous>, transform_indices = @transform_5, window_bounds = array<i64: 512, 128>}, {pipeline_mode = #tpu.pipeline_mode<synchronous>, transform_indices = @transform_6, window_bounds = array<i64: 1, 128>}, {pipeline_mode = #tpu.pipeline_mode<synchronous>, transform_indices = @transform_7, window_bounds = array<i64: 128, 10>}, {pipeline_mode = #tpu.pipeline_mode<synchronous>, transform_indices = @transform_8, window_bounds = array<i64: 1, 10>}, {pipeline_mode = #tpu.pipeline_mode<synchronous>, transform_indices = @transform_9, window_bounds = array<i64: 2, 10>}]} {
    %c0 = arith.constant 0 : index
    %c0_0 = arith.constant 0 : index
    %0 = vector.load %arg1[%c0, %c0_0] : memref<2x192xf32, #tpu.memory_space<vmem>>, vector<2x192xf32>
    %c0_1 = arith.constant 0 : index
    %c0_2 = arith.constant 0 : index
    %1 = vector.load %arg2[%c0_1, %c0_2] : memref<192x256xf32, #tpu.memory_space<vmem>>, vector<192x256xf32>
    %cst = arith.constant dense<0.000000e+00> : vector<2x256xf32>
    %2 = tpu.matmul %0, %1, %cst {dimension_numbers = #tpu.dot_dimension_numbers<[1], [0], [0], [1], [0, 0, 1, 1], [], []>} : vector<2x192xf32>, vector<192x256xf32>, vector<2x256xf32> -> vector<2x256xf32>
    %c0_3 = arith.constant 0 : index
    %c0_4 = arith.constant 0 : index
    %3 = vector.load %arg3[%c0_3, %c0_4] : memref<1x256xf32, #tpu.memory_space<vmem>>, vector<1x256xf32>
    %4 = vector.broadcast %3 : vector<1x256xf32> to vector<2x256xf32>
    %5 = arith.addf %2, %4 : vector<2x256xf32>
    %cst_5 = arith.constant 0.000000e+00 : f32
    %6 = vector.broadcast %cst_5 : f32 to vector<2x256xf32>
    %7 = arith.maximumf %5, %6 : vector<2x256xf32>
    %c0_6 = arith.constant 0 : index
    %c0_7 = arith.constant 0 : index
    %8 = vector.load %arg4[%c0_6, %c0_7] : memref<256x512xf32, #tpu.memory_space<vmem>>, vector<256x512xf32>
    %cst_8 = arith.constant dense<0.000000e+00> : vector<2x512xf32>
    %9 = tpu.matmul %7, %8, %cst_8 {dimension_numbers = #tpu.dot_dimension_numbers<[1], [0], [0], [1], [0, 0, 1, 1], [], []>} : vector<2x256xf32>, vector<256x512xf32>, vector<2x512xf32> -> vector<2x512xf32>
    %c0_9 = arith.constant 0 : index
    %c0_10 = arith.constant 0 : index
    %10 = vector.load %arg5[%c0_9, %c0_10] : memref<1x512xf32, #tpu.memory_space<vmem>>, vector<1x512xf32>
    %11 = vector.broadcast %10 : vector<1x512xf32> to vector<2x512xf32>
    %12 = arith.addf %9, %11 : vector<2x512xf32>
    %cst_11 = arith.constant 0.000000e+00 : f32
    %13 = vector.broadcast %cst_11 : f32 to vector<2x512xf32>
    %14 = arith.maximumf %12, %13 : vector<2x512xf32>
    %c0_12 = arith.constant 0 : index
    %c0_13 = arith.constant 0 : index
    %15 = vector.load %arg6[%c0_12, %c0_13] : memref<512x128xf32, #tpu.memory_space<vmem>>, vector<512x128xf32>
    %cst_14 = arith.constant dense<0.000000e+00> : vector<2x128xf32>
    %16 = tpu.matmul %14, %15, %cst_14 {dimension_numbers = #tpu.dot_dimension_numbers<[1], [0], [0], [1], [0, 0, 1, 1], [], []>} : vector<2x512xf32>, vector<512x128xf32>, vector<2x128xf32> -> vector<2x128xf32>
    %c0_15 = arith.constant 0 : index
    %c0_16 = arith.constant 0 : index
    %17 = vector.load %arg7[%c0_15, %c0_16] : memref<1x128xf32, #tpu.memory_space<vmem>>, vector<1x128xf32>
    %18 = vector.broadcast %17 : vector<1x128xf32> to vector<2x128xf32>
    %19 = arith.addf %16, %18 : vector<2x128xf32>
    %cst_17 = arith.constant 0.000000e+00 : f32
    %20 = vector.broadcast %cst_17 : f32 to vector<2x128xf32>
    %21 = arith.maximumf %19, %20 : vector<2x128xf32>
    %c0_18 = arith.constant 0 : index
    %c0_19 = arith.constant 0 : index
    %22 = vector.load %arg8[%c0_18, %c0_19] : memref<128x10xf32, #tpu.memory_space<vmem>>, vector<128x10xf32>
    %cst_20 = arith.constant dense<0.000000e+00> : vector<2x10xf32>
    %23 = tpu.matmul %21, %22, %cst_20 {dimension_numbers = #tpu.dot_dimension_numbers<[1], [0], [0], [1], [0, 0, 1, 1], [], []>} : vector<2x128xf32>, vector<128x10xf32>, vector<2x10xf32> -> vector<2x10xf32>
    %c0_21 = arith.constant 0 : index
    %c0_22 = arith.constant 0 : index
    %24 = vector.load %arg9[%c0_21, %c0_22] : memref<1x10xf32, #tpu.memory_space<vmem>>, vector<1x10xf32>
    %25 = vector.broadcast %24 : vector<1x10xf32> to vector<2x10xf32>
    %26 = arith.addf %23, %25 : vector<2x10xf32>
    %c0_23 = arith.constant 0 : index
    %c0_24 = arith.constant 0 : index
    %27 = vector.load %arg10[%c0_23, %c0_24] : memref<2x10xf32, #tpu.memory_space<vmem>>, vector<2x10xf32>
    tpu.vector_store %arg10[%c0_23, %c0_24], %26 {strides = array<i32>} : memref<2x10xf32, #tpu.memory_space<vmem>>, vector<2x10xf32>,
    return
  }
  func.func @transform_0(%arg0: i32) -> (i32, i32) {
    %c0_i32 = arith.constant 0 : i32
    %c0_i32_0 = arith.constant 0 : i32
    %c0_i32_1 = arith.constant 0 : i32
    return %c0_i32, %c0_i32_0 : i32, i32
  }
  func.func @transform_1(%arg0: i32) -> (i32, i32) {
    %c0_i32 = arith.constant 0 : i32
    %c0_i32_0 = arith.constant 0 : i32
    %c0_i32_1 = arith.constant 0 : i32
    return %c0_i32, %c0_i32_0 : i32, i32
  }
  func.func @transform_2(%arg0: i32) -> (i32, i32) {
    %c0_i32 = arith.constant 0 : i32
    %c0_i32_0 = arith.constant 0 : i32
    %c0_i32_1 = arith.constant 0 : i32
    return %c0_i32, %c0_i32_0 : i32, i32
  }
  func.func @transform_3(%arg0: i32) -> (i32, i32) {
    %c0_i32 = arith.constant 0 : i32
    %c0_i32_0 = arith.constant 0 : i32
    %c0_i32_1 = arith.constant 0 : i32
    return %c0_i32, %c0_i32_0 : i32, i32
  }
  func.func @transform_4(%arg0: i32) -> (i32, i32) {
    %c0_i32 = arith.constant 0 : i32
    %c0_i32_0 = arith.constant 0 : i32
    %c0_i32_1 = arith.constant 0 : i32
    return %c0_i32, %c0_i32_0 : i32, i32
  }
  func.func @transform_5(%arg0: i32) -> (i32, i32) {
    %c0_i32 = arith.constant 0 : i32
    %c0_i32_0 = arith.constant 0 : i32
    %c0_i32_1 = arith.constant 0 : i32
    return %c0_i32, %c0_i32_0 : i32, i32
  }
  func.func @transform_6(%arg0: i32) -> (i32, i32) {
    %c0_i32 = arith.constant 0 : i32
    %c0_i32_0 = arith.constant 0 : i32
    %c0_i32_1 = arith.constant 0 : i32
    return %c0_i32, %c0_i32_0 : i32, i32
  }
  func.func @transform_7(%arg0: i32) -> (i32, i32) {
    %c0_i32 = arith.constant 0 : i32
    %c0_i32_0 = arith.constant 0 : i32
    %c0_i32_1 = arith.constant 0 : i32
    return %c0_i32, %c0_i32_0 : i32, i32
  }
  func.func @transform_8(%arg0: i32) -> (i32, i32) {
    %c0_i32 = arith.constant 0 : i32
    %c0_i32_0 = arith.constant 0 : i32
    %c0_i32_1 = arith.constant 0 : i32
    return %c0_i32, %c0_i32_0 : i32, i32
  }
  func.func @transform_9(%arg0: i32) -> (i32, i32) {
    %c0_i32 = arith.constant 0 : i32
    %c0_i32_0 = arith.constant 0 : i32
    %c0_i32_1 = arith.constant 0 : i32
    return %c0_i32, %c0_i32_0 : i32, i32
  }
}

</mosaic_0001>

<bundles_post_ra>
// kernel: net_forward_pallas.1
= control target key start
LH: loop header
LB: loop body
LE: loop exit
PB: predicated region body
PF: predicated region fallthrough
CT: control target
= control target key end

     0   :  { %14 = vsyncpa [#allocation3], 0  ;;  %s989_s0 = inlined_call_operand.vmem [shape: f32[2,192], index: 0, kind: input, shape index: {}]   ;;  %s990_s1 = inlined_call_operand.hbm [shape: f32[192,256], index: 1, kind: input, shape index: {}]   ;;  %s991_s2 = inlined_call_operand.vmem [shape: f32[1,256], index: 2, kind: input, shape index: {}]   ;;  %s992_s3 = inlined_call_operand.hbm [shape: f32[256,512], index: 3, kind: input, shape index: {}]   ;;  %s993_s4 = inlined_call_operand.vmem [shape: f32[1,512], index: 4, kind: input, shape index: {}]   ;;  %s994_s5 = inlined_call_operand.hbm [shape: f32[512,128], index: 5, kind: input, shape index: {}]   ;;  %s995_s6 = inlined_call_operand.vmem [shape: f32[1,128], index: 6, kind: input, shape index: {}]   ;;  %s996_s7 = inlined_call_operand.vmem [shape: f32[128,10], index: 7, kind: input, shape index: {}]   ;;  %s997_s8 = inlined_call_operand.vmem [shape: f32[1,10], index: 8, kind: input, shape index: {}]   ;;  %s998_s9 = inlined_call_operand.hbm [shape: f32[2,10], index: 9, kind: output, shape index: {}]  }
   0x1   :  { %15 = vsyncpa [#allocation6], 0  ;;  %s38_s11 = sshll.u32 %s992_s3, 4  ;;  %s39_s11 = int_to_ptr.hbm [resolvable:$true] %s38_s11 }
   0x2   :  { %16 = vsyncpa [#allocation4], 0  ;;  %s852_s12 = smov [#allocation5]   ;;  %s23_s16 = sshll.u32 %s990_s1, 4  ;;  %s24_s16 = int_to_ptr.hbm [resolvable:$true] %s23_s16 }
   0x3   :  { %s40_s13 = sshll.u32 %s852_s12, 4  ;;  %s853_s17 = smov 512   ;;  %s41_s13 = int_to_ptr.vmem [resolvable:$true] %s40_s13 }
   0x4   :  { %s854_s18 = smov 32   ;;  %s855_s19 = smov [#allocation2]  }
   0x5   :  { %46 = dma.hbm_to_vmem [thread:$0]  %s39_s11, 16384, %s41_s13, [#allocation6], %s853_s17, %s853_s17, %s854_s18  }
   0x6   :  { %s25_s20 = sshll.u32 %s855_s19, 4  ;;  %s856_s21 = smov 256   ;;  %s26_s20 = int_to_ptr.vmem [resolvable:$true] %s25_s20 }
   0x7   :  { %s857_s22 = smov 16   ;;  %s53_s24 = sshll.u32 %s994_s5, 4  ;;  %s54_s24 = int_to_ptr.hbm [resolvable:$true] %s53_s24 }
   0x8   :  { %31 = dma.hbm_to_vmem [thread:$0]  %s24_s16, 6144, %s26_s20, [#allocation3], %s856_s21, %s856_s21, %s857_s22  }
   0x9   :  { %s858_s25 = smov [#allocation7]   ;;  %s859_s27 = smov 128  }
   0xa   :  { %s55_s26 = sshll.u32 %s858_s25, 4  ;;  %s860_s1 = smov 8   ;;  %s56_s26 = int_to_ptr.vmem [resolvable:$true] %s55_s26 }
   0xb   :  { %61 = dma.hbm_to_vmem [thread:$0]  %s54_s24, 8192, %s56_s26, [#allocation6], %s859_s27, %s859_s27, %s860_s1  }
   0xc   :  { %846 = dma.done.wait [#allocation3], 6144  }
   0xd   :  { %847 = vsyncadd [#allocation3], 4294961152 }
   0xe   :  { %848 = dma.done.wait [#allocation6], 24576  }
   0xf   :  { %849 = vsyncadd [#allocation6], 4294942720  ;;  %v111_v0 = vld [vmem:[#allocation2 + $0xf0] sm:$0xff]  ;;  %v112_v1 = vld [vmem:[#allocation2 + $0xf8] sm:$0xff]  ;;  %vm140_vm0 = vcmask 523264   ;;  %vm716_vm1 = vcmask 74752  }
  0x10   :  { %v109_v2 = vld [vmem:[#allocation2 + $0xe0] sm:$0xff]  ;;  %143 = vmatpush.msra.mxu0 %v111_v0  ;;  %183 = vmatpush.msra.mxu2 %v112_v1  ;;  %v110_v3 = vld [vmem:[#allocation2 + $0xe8] sm:$0xff]  ;;  %v127_v4 = vld [vmem:[#allocation2 + $0x170] sm:$0xff] }
  0x11   :  { %171 = vmatpush.msra.mxu3 %v127_v4  ;;  %v107_v5 = vld [vmem:[#allocation2 + $0xd0] sm:$0xff]  ;;  %v108_v6 = vld [vmem:[#allocation2 + $0xd8] sm:$0xff]  ;;  %v125_v7 = vld [vmem:[#allocation2 + $0x160] sm:$0xff] }
  0x12   :  { %144 = vmatpush.msra.mxu0 %v109_v2  ;;  %184 = vmatpush.msra.mxu2 %v110_v3  ;;  %v123_v8 = vld [vmem:[#allocation2 + $0x150] sm:$0xff]  ;;  %v105_v9 = vld [vmem:[#allocation2 + $0xc0] sm:$0xff]  ;;  %v106_v10 = vld [vmem:[#allocation2 + $0xc8] sm:$0xff] }
  0x13   :  { %172 = vmatpush.msra.mxu3 %v125_v7  ;;  %v121_v11 = vld [vmem:[#allocation2 + $0x140] sm:$0xff]  ;;  %v103_v12 = vld [vmem:[#allocation2 + $0xb0] sm:$0xff]  ;;  %v104_v13 = vld [vmem:[#allocation2 + $0xb8] sm:$0xff] }
  0x14   :  { %145 = vmatpush.msra.mxu0 %v107_v5  ;;  %185 = vmatpush.msra.mxu2 %v108_v6  ;;  %v119_v14 = vld [vmem:[#allocation2 + $0x130] sm:$0xff]  ;;  %v101_v15 = vld [vmem:[#allocation2 + $0xa0] sm:$0xff]  ;;  %v102_v16 = vld [vmem:[#allocation2 + $0xa8] sm:$0xff] }
  0x15   :  { %173 = vmatpush.msra.mxu3 %v123_v8  ;;  %v117_v17 = vld [vmem:[#allocation2 + $0x120] sm:$0xff]  ;;  %v99_v18 = vld [vmem:[#allocation2 + $0x90] sm:$0xff]  ;;  %v100_v19 = vld [vmem:[#allocation2 + $0x98] sm:$0xff] }
  0x16   :  { %146 = vmatpush.msra.mxu0 %v105_v9  ;;  %186 = vmatpush.msra.mxu2 %v106_v10  ;;  %v115_v20 = vld [vmem:[#allocation2 + $0x110] sm:$0xff]  ;;  %v97_v21 = vld [vmem:[#allocation2 + $0x80] sm:$0xff]  ;;  %v98_v22 = vld [vmem:[#allocation2 + $0x88] sm:$0xff] }
  0x17   :  { %174 = vmatpush.msra.mxu3 %v121_v11  ;;  %v80_v23 = vld [vmem:[%s989_s0] sm:$0xf]  ;;  %v113_v24 = vld [vmem:[#allocation2 + $0x100] sm:$0xff]  ;;  %v95_v25 = vld [vmem:[#allocation2 + $0x70] sm:$0xff] }
  0x18   :  { %147 = vmatpush.msra.mxu0 %v103_v12  ;;  %187 = vmatpush.msra.mxu2 %v104_v13  ;;  %136 = vst [vmem:[#allocation1] ss:$4 sm:$0xff] %v80_v23  ;;  %v96_v26 = vld [vmem:[#allocation2 + $0x78] sm:$0xff]  ;;  %v93_v28 = vld [vmem:[#allocation2 + $0x60] sm:$0xff]  ;;  %v94_v29 = vld [vmem:[#allocation2 + $0x68] sm:$0xff] }
  0x19   :  { %175 = vmatpush.msra.mxu3 %v119_v14  ;;  %v128_v27 = vld [vmem:[#allocation2 + $0x178] sm:$0xff]  ;;  %v285_v30 = vld [vmem:[#allocation5 + $0x1e0] sm:$0xff]  ;;  %v126_v31 = vld [vmem:[#allocation2 + $0x168] sm:$0xff] }
  0x1a   :  { %148 = vmatpush.msra.mxu0 %v101_v15  ;;  %188 = vmatpush.msra.mxu2 %v102_v16  ;;  %v281_v32 = vld [vmem:[#allocation5 + $0x1c0] sm:$0xff]  ;;  %v91_v33 = vld [vmem:[#allocation2 + $0x50] sm:$0xff]  ;;  %v92_v34 = vld [vmem:[#allocation2 + $0x58] sm:$0xff] }
  0x1b   :  { %176 = vmatpush.msra.mxu3 %v117_v17  ;;  %363 = vmatpush.msra.mxu1 %v285_v30  ;;  %v124_v35 = vld [vmem:[#allocation2 + $0x158] sm:$0xff]  ;;  %v277_v36 = vld [vmem:[#allocation5 + $0x1a0] sm:$0xff]  ;;  %v90_v38 = vld [vmem:[#allocation2 + $0x48] sm:$0xff] }
  0x1c   :  { %149 = vmatpush.msra.mxu0 %v99_v18  ;;  %189 = vmatpush.msra.mxu2 %v100_v19  ;;  %v89_v37 = vld [vmem:[#allocation2 + $0x40] sm:$0xff]  ;;  %v122_v39 = vld [vmem:[#allocation2 + $0x148] sm:$0xff]  ;;  %v87_v41 = vld [vmem:[#allocation2 + $0x30] sm:$0xff] }
  0x1d   :  { %177 = vmatpush.msra.mxu3 %v115_v20  ;;  %364 = vmatpush.msra.mxu1 %v281_v32  ;;  %v273_v40 = vld [vmem:[#allocation5 + $0x180] sm:$0xff]  ;;  %v88_v42 = vld [vmem:[#allocation2 + $0x38] sm:$0xff]  ;;  %v86_v46 = vld [vmem:[#allocation2 + $0x28] sm:$0xff] }
  0x1e   :  { %150 = vmatpush.msra.mxu0 %v97_v21  ;;  %190 = vmatpush.msra.mxu2 %v98_v22  ;;  %v269_v44 = vld [vmem:[#allocation5 + $0x160] sm:$0xff]  ;;  %v120_v47 = vld [vmem:[#allocation2 + $0x138] sm:$0xff]  ;;  %v83_v49 = vld [vmem:[#allocation2 + $0x10] sm:$0xff] }
  0x1f   :  { %178 = vmatpush.msra.mxu3 %v113_v24  ;;  %365 = vmatpush.msra.mxu1 %v277_v36  ;;  %v138_v43 = vld.sshfl [vmem:[#allocation1 + $0x8] sm:$0xff pattern:$0x73625140]  ;;  %v84_v50 = vld [vmem:[#allocation2 + $0x18] sm:$0xff]  ;;  %v118_v51 = vld [vmem:[#allocation2 + $0x128] sm:$0xff] }
  0x20   :  { %151 = vmatpush.msra.mxu0 %v95_v25  ;;  %191 = vmatpush.msra.mxu2 %v96_v26  ;;  %v85_v45 = vld [vmem:[#allocation2 + $0x20] sm:$0xff]  ;;  %v82_v54 = vld [vmem:[#allocation2 + $0x8] sm:$0xff]  ;;  %v116_v55 = vld [vmem:[#allocation2 + $0x118] sm:$0xff] }
  0x21   :  { %211 = vmatpush.msrb.mxu3 %v128_v27  ;;  %366 = vmatpush.msra.mxu1 %v273_v40  ;;  %v265_v48 = vld [vmem:[#allocation5 + $0x140] sm:$0xff]  ;;  %v137_v56 = vld.sshfl [vmem:[#allocation1] sm:$0xff pattern:$0x73625140]  ;;  %v286_v57 = vld [vmem:[#allocation5 + $0x1e8] sm:$0xff] }
  0x22   :  { %152 = vmatpush.msra.mxu0 %v93_v28  ;;  %192 = vmatpush.msra.mxu2 %v94_v29  ;;  %v261_v52 = vld [vmem:[#allocation5 + $0x120] sm:$0xff]  ;;  %v114_v58 = vld [vmem:[#allocation2 + $0x108] sm:$0xff]  ;;  %v287_v36 = vld [vmem:[#allocation5 + $0x1f0] sm:$0xff] }
  0x23   :  { %212 = vmatpush.msrb.mxu3 %v126_v31  ;;  %367 = vmatpush.msra.mxu1 %v269_v44  ;;  %v81_v53 = vld [vmem:[#allocation2] sm:$0xff]  ;;  %v350_v59 = vld [vmem:[#allocation5 + $0x3e8] sm:$0xff]  ;;  %v283_v40 = vld [vmem:[#allocation5 + $0x1d0] sm:$0xff] }
  0x24   :  { %153 = vmatpush.msra.mxu0 %v91_v33  ;;  %193 = vmatpush.msra.mxu2 %v92_v34  ;;  %v282_v60 = vld [vmem:[#allocation5 + $0x1c8] sm:$0xff]  ;;  %v349_v61 = vld [vmem:[#allocation5 + $0x3e0] sm:$0xff]  ;;  %v279_v44 = vld [vmem:[#allocation5 + $0x1b0] sm:$0xff] }
  0x25   :  { %213 = vmatpush.msrb.mxu3 %v124_v35  ;;  %368 = vmatpush.msra.mxu1 %v265_v48  ;;  %v346_v62 = vld [vmem:[#allocation5 + $0x3c8] sm:$0xff]  ;;  %v257_v0 = vld [vmem:[#allocation5 + $0x100] sm:$0xff]  ;;  %v275_v48 = vld [vmem:[#allocation5 + $0x190] sm:$0xff] }
  0x26   :  { %154 = vmatpush.msra.mxu0 %v89_v37  ;;  %194 = vmatpush.msra.mxu2 %v90_v38  ;;  %v278_v63 = vld [vmem:[#allocation5 + $0x1a8] sm:$0xff]  ;;  %v345_v1 = vld [vmem:[#allocation5 + $0x3c0] sm:$0xff] }
  0x27   :  { %214 = vmatpush.msrb.mxu3 %v122_v39  ;;  %369 = vmatpush.msra.mxu1 %v261_v52  ;;  %v342_v2 = vld [vmem:[#allocation5 + $0x3a8] sm:$0xff]  ;;  %v253_v4 = vld [vmem:[#allocation5 + $0xe0] sm:$0xff]  ;;  %v271_v52 = vld [vmem:[#allocation5 + $0x170] sm:$0xff] }
  0x28   :  { %155 = vmatpush.msra.mxu0 %v87_v41  ;;  %195 = vmatpush.msra.mxu2 %v88_v42  ;;  %v274_v3 = vld [vmem:[#allocation5 + $0x188] sm:$0xff]  ;;  %v341_v5 = vld [vmem:[#allocation5 + $0x3a0] sm:$0xff] }
  0x29   :  { %736 = vmatmul.msk.f32.vlgmr.msra.gmra.mxu3 %vm140_vm0, %v138_v43  ;;  %v338_v6 = vld [vmem:[#allocation5 + $0x388] sm:$0xff]  ;;  %370 = vmatpush.msra.mxu1 %v257_v0  ;;  %v249_v8 = vld [vmem:[#allocation5 + $0xc0] sm:$0xff]  ;;  %v348_v0 = vld [vmem:[#allocation5 + $0x3d8] sm:$0xff] }
  0x2a   :  { %156 = vmatpush.msra.mxu0 %v85_v45  ;;  %196 = vmatpush.msra.mxu2 %v86_v46  ;;  %v270_v7 = vld [vmem:[#allocation5 + $0x168] sm:$0xff]  ;;  %v337_v9 = vld [vmem:[#allocation5 + $0x380] sm:$0xff] }
  0x2b   :  { %215 = vmatpush.msrb.mxu3 %v120_v47  ;;  %v334_v10 = vld [vmem:[#allocation5 + $0x368] sm:$0xff]  ;;  %371 = vmatpush.msra.mxu1 %v253_v4  ;;  %v245_v12 = vld [vmem:[#allocation5 + $0xa0] sm:$0xff]  ;;  %v344_v4 = vld [vmem:[#allocation5 + $0x3b8] sm:$0xff] }
  0x2c   :  { %157 = vmatpush.msra.mxu0 %v83_v49  ;;  %197 = vmatpush.msra.mxu2 %v84_v50  ;;  %v266_v11 = vld [vmem:[#allocation5 + $0x148] sm:$0xff]  ;;  %v333_v13 = vld [vmem:[#allocation5 + $0x360] sm:$0xff] }
  0x2d   :  { %216 = vmatpush.msrb.mxu3 %v118_v51  ;;  %v330_v14 = vld [vmem:[#allocation5 + $0x348] sm:$0xff]  ;;  %372 = vmatpush.msra.mxu1 %v249_v8  ;;  %v241_v16 = vld [vmem:[#allocation5 + $0x80] sm:$0xff]  ;;  %v268_v8 = vld [vmem:[#allocation5 + $0x158] sm:$0xff] }
  0x2e   :  { %158 = vmatpush.msra.mxu0 %v81_v53  ;;  %198 = vmatpush.msra.mxu2 %v82_v54  ;;  %v262_v15 = vld [vmem:[#allocation5 + $0x128] sm:$0xff]  ;;  %v329_v17 = vld [vmem:[#allocation5 + $0x340] sm:$0xff]  ;;  %v288_v53 = vld [vmem:[#allocation5 + $0x1f8] sm:$0xff] }
  0x2f   :  { %217 = vmatpush.msrb.mxu3 %v116_v55  ;;  %159 = vmatmul.f32.vlgmr.msra.gmra.mxu0 %v137_v56  ;;  %v326_v18 = vld [vmem:[#allocation5 + $0x328] sm:$0xff]  ;;  %v237_v20 = vld [vmem:[#allocation5 + $0x60] sm:$0xff] }
  0x30   :  { %199 = vmatmul.f32.vlgmr.msra.gmra.mxu2 %v137_v56  ;;  %403 = vmatpush.msrb.mxu0 %v286_v57  ;;  %v258_v19 = vld [vmem:[#allocation5 + $0x108] sm:$0xff]  ;;  %v325_v21 = vld [vmem:[#allocation5 + $0x320] sm:$0xff]  ;;  %v267_v56 = vld [vmem:[#allocation5 + $0x150] sm:$0xff] }
  0x31   :  { %218 = vmatpush.msrb.mxu3 %v114_v58  ;;  %423 = vmatpush.msrb.mxu2 %v350_v59  ;;  %v322_v22 = vld [vmem:[#allocation5 + $0x308] sm:$0xff]  ;;  %v233_v24 = vld [vmem:[#allocation5 + $0x40] sm:$0xff]  ;;  %v284_v57 = vld [vmem:[#allocation5 + $0x1d8] sm:$0xff] }
  0x32   :  { %737 = vmatmul.msk.f32.vlgmr.msrb.gmra.mxu3 %vm140_vm0, %v138_v43  ;;  %404 = vmatpush.msrb.mxu0 %v282_v60  ;;  %v254_v23 = vld [vmem:[#allocation5 + $0xe8] sm:$0xff]  ;;  %v321_v25 = vld [vmem:[#allocation5 + $0x300] sm:$0xff]  ;;  %v351_v59 = vld [vmem:[#allocation5 + $0x3f0] sm:$0xff] }
  0x33   :  { %383 = vmatpush.msra.mxu3 %v349_v61  ;;  %424 = vmatpush.msrb.mxu2 %v346_v62  ;;  %v318_v26 = vld [vmem:[#allocation5 + $0x2e8] sm:$0xff]  ;;  %v229_v28 = vld [vmem:[#allocation5 + $0x20] sm:$0xff]  ;;  %v352_v60 = vld [vmem:[#allocation5 + $0x3f8] sm:$0xff] }
  0x34   :  { %405 = vmatpush.msrb.mxu0 %v278_v63  ;;  %373 = vmatpush.msra.mxu1 %v245_v12  ;;  %v250_v27 = vld [vmem:[#allocation5 + $0xc8] sm:$0xff]  ;;  %v317_v29 = vld [vmem:[#allocation5 + $0x2e0] sm:$0xff]  ;;  %v280_v61 = vld [vmem:[#allocation5 + $0x1b8] sm:$0xff] }
  0x35   :  { %384 = vmatpush.msra.mxu3 %v345_v1  ;;  %425 = vmatpush.msrb.mxu2 %v342_v2  ;;  %v314_v30 = vld [vmem:[#allocation5 + $0x2c8] sm:$0xff]  ;;  %v225_v32 = vld [vmem:[#allocation5] sm:$0xff]  ;;  %v263_v62 = vld [vmem:[#allocation5 + $0x130] sm:$0xff] }
  0x36   :  { %406 = vmatpush.msrb.mxu0 %v274_v3  ;;  %374 = vmatpush.msra.mxu1 %v241_v16  ;;  %v246_v31 = vld [vmem:[#allocation5 + $0xa8] sm:$0xff]  ;;  %v313_v33 = vld [vmem:[#allocation5 + $0x2c0] sm:$0xff]  ;;  %v347_v63 = vld [vmem:[#allocation5 + $0x3d0] sm:$0xff] }
  0x37   :  { %385 = vmatpush.msra.mxu3 %v341_v5  ;;  %426 = vmatpush.msrb.mxu2 %v338_v6  ;;  %v310_v34 = vld [vmem:[#allocation5 + $0x2a8] sm:$0xff]  ;;  %v309_v37 = vld [vmem:[#allocation5 + $0x2a0] sm:$0xff]  ;;  %v276_v1 = vld [vmem:[#allocation5 + $0x198] sm:$0xff] }
  0x38   :  { %407 = vmatpush.msrb.mxu0 %v270_v7  ;;  %375 = vmatpush.msra.mxu1 %v237_v20  ;;  %v242_v35 = vld [vmem:[#allocation5 + $0x88] sm:$0xff]  ;;  %v305_v41 = vld [vmem:[#allocation5 + $0x280] sm:$0xff]  ;;  %v259_v2 = vld [vmem:[#allocation5 + $0x110] sm:$0xff] }
  0x39   :  { %386 = vmatpush.msra.mxu3 %v337_v9  ;;  %427 = vmatpush.msrb.mxu2 %v334_v10  ;;  %v306_v38 = vld [vmem:[#allocation5 + $0x288] sm:$0xff]  ;;  %v301_v45 = vld [vmem:[#allocation5 + $0x260] sm:$0xff]  ;;  %v343_v3 = vld [vmem:[#allocation5 + $0x3b0] sm:$0xff] }
  0x3a   :  { %408 = vmatpush.msrb.mxu0 %v266_v11  ;;  %376 = vmatpush.msra.mxu1 %v233_v24  ;;  %v238_v39 = vld [vmem:[#allocation5 + $0x68] sm:$0xff]  ;;  %v297_v49 = vld [vmem:[#allocation5 + $0x240] sm:$0xff]  ;;  %v272_v5 = vld [vmem:[#allocation5 + $0x178] sm:$0xff] }
  0x3b   :  { %387 = vmatpush.msra.mxu3 %v333_v13  ;;  %428 = vmatpush.msrb.mxu2 %v330_v14  ;;  %v302_v42 = vld [vmem:[#allocation5 + $0x268] sm:$0xff]  ;;  %v293_v54 = vld [vmem:[#allocation5 + $0x220] sm:$0xff]  ;;  %v339_v6 = vld [vmem:[#allocation5 + $0x390] sm:$0xff] }
  0x3c   :  { %409 = vmatpush.msrb.mxu0 %v262_v15  ;;  %377 = vmatpush.msra.mxu1 %v229_v28  ;;  %v234_v43 = vld [vmem:[#allocation5 + $0x48] sm:$0xff]  ;;  %v289_v58 = vld [vmem:[#allocation5 + $0x200] sm:$0xff]  ;;  %v340_v7 = vld [vmem:[#allocation5 + $0x398] sm:$0xff] }
  0x3d   :  { %388 = vmatpush.msra.mxu3 %v329_v17  ;;  %429 = vmatpush.msrb.mxu2 %v326_v18  ;;  %v298_v46 = vld [vmem:[#allocation5 + $0x248] sm:$0xff]  ;;  %v335_v9 = vld [vmem:[#allocation5 + $0x370] sm:$0xff]  ;;  %v336_v10 = vld [vmem:[#allocation5 + $0x378] sm:$0xff] }
  0x3e   :  { %410 = vmatpush.msrb.mxu0 %v258_v19  ;;  %378 = vmatpush.msra.mxu1 %v225_v32  ;;  %v230_v47 = vld [vmem:[#allocation5 + $0x28] sm:$0xff]  ;;  %v264_v11 = vld [vmem:[#allocation5 + $0x138] sm:$0xff]  ;;  %v255_v13 = vld [vmem:[#allocation5 + $0xf0] sm:$0xff] }
  0x3f   :  { %389 = vmatpush.msra.mxu3 %v325_v21  ;;  %430 = vmatpush.msrb.mxu2 %v322_v22  ;;  %v294_v50 = vld [vmem:[#allocation5 + $0x228] sm:$0xff]  ;;  %v260_v12 = vld [vmem:[#allocation5 + $0x118] sm:$0xff]  ;;  %v331_v14 = vld [vmem:[#allocation5 + $0x350] sm:$0xff] }
  0x40   :  { %411 = vmatpush.msrb.mxu0 %v254_v23  ;;  %443 = vmatpush.msrb.mxu1 %v287_v36  ;;  %v226_v51 = vld [vmem:[#allocation5 + $0x8] sm:$0xff]  ;;  %v256_v15 = vld [vmem:[#allocation5 + $0xf8] sm:$0xff]  ;;  %v251_v17 = vld [vmem:[#allocation5 + $0xd0] sm:$0xff] }
  0x41   :  { %390 = vmatpush.msra.mxu3 %v321_v25  ;;  %431 = vmatpush.msrb.mxu2 %v318_v26  ;;  %v290_v55 = vld [vmem:[#allocation5 + $0x208] sm:$0xff]  ;;  %v332_v16 = vld [vmem:[#allocation5 + $0x358] sm:$0xff]  ;;  %v327_v18 = vld [vmem:[#allocation5 + $0x330] sm:$0xff] }
  0x42   :  { %412 = vmatpush.msrb.mxu0 %v250_v27  ;;  %444 = vmatpush.msrb.mxu1 %v283_v40  ;;  %v252_v19 = vld [vmem:[#allocation5 + $0xd8] sm:$0xff]  ;;  %v247_v21 = vld [vmem:[#allocation5 + $0xb0] sm:$0xff] }
  0x43   :  { %391 = vmatpush.msra.mxu3 %v317_v29  ;;  %432 = vmatpush.msrb.mxu2 %v314_v30  ;;  %v328_v20 = vld [vmem:[#allocation5 + $0x338] sm:$0xff]  ;;  %v323_v22 = vld [vmem:[#allocation5 + $0x310] sm:$0xff] }
  0x44   :  { %413 = vmatpush.msrb.mxu0 %v246_v31  ;;  %445 = vmatpush.msrb.mxu1 %v279_v44  ;;  %v248_v23 = vld [vmem:[#allocation5 + $0xb8] sm:$0xff]  ;;  %v243_v25 = vld [vmem:[#allocation5 + $0x90] sm:$0xff] }
  0x45   :  { %392 = vmatpush.msra.mxu3 %v313_v33  ;;  %433 = vmatpush.msrb.mxu2 %v310_v34  ;;  %v324_v24 = vld [vmem:[#allocation5 + $0x318] sm:$0xff]  ;;  %v319_v26 = vld [vmem:[#allocation5 + $0x2f0] sm:$0xff] }
  0x46   :  { %414 = vmatpush.msrb.mxu0 %v242_v35  ;;  %446 = vmatpush.msrb.mxu1 %v275_v48  ;;  %v244_v27 = vld [vmem:[#allocation5 + $0x98] sm:$0xff]  ;;  %v239_v29 = vld [vmem:[#allocation5 + $0x70] sm:$0xff] }
  0x47   :  { %393 = vmatpush.msra.mxu3 %v309_v37  ;;  %434 = vmatpush.msrb.mxu2 %v306_v38  ;;  %v320_v28 = vld [vmem:[#allocation5 + $0x2f8] sm:$0xff]  ;;  %v315_v30 = vld [vmem:[#allocation5 + $0x2d0] sm:$0xff] }
  0x48   :  { %415 = vmatpush.msrb.mxu0 %v238_v39  ;;  %447 = vmatpush.msrb.mxu1 %v271_v52  ;;  %v240_v31 = vld [vmem:[#allocation5 + $0x78] sm:$0xff]  ;;  %v235_v33 = vld [vmem:[#allocation5 + $0x50] sm:$0xff] }
  0x49   :  { %394 = vmatpush.msra.mxu3 %v305_v41  ;;  %435 = vmatpush.msrb.mxu2 %v302_v42  ;;  %v316_v32 = vld [vmem:[#allocation5 + $0x2d8] sm:$0xff]  ;;  %v311_v34 = vld [vmem:[#allocation5 + $0x2b0] sm:$0xff] }
  0x4a   :  { %416 = vmatpush.msrb.mxu0 %v234_v43  ;;  %448 = vmatpush.msrb.mxu1 %v267_v56  ;;  %v236_v35 = vld [vmem:[#allocation5 + $0x58] sm:$0xff]  ;;  %v231_v37 = vld [vmem:[#allocation5 + $0x30] sm:$0xff] }
  0x4b   :  { %395 = vmatpush.msra.mxu3 %v301_v45  ;;  %436 = vmatpush.msrb.mxu2 %v298_v46  ;;  %v312_v36 = vld [vmem:[#allocation5 + $0x2b8] sm:$0xff]  ;;  %v307_v38 = vld [vmem:[#allocation5 + $0x290] sm:$0xff] }
  0x4c   :  { %417 = vmatpush.msrb.mxu0 %v230_v47  ;;  %449 = vmatpush.msrb.mxu1 %v263_v62  ;;  %v232_v39 = vld [vmem:[#allocation5 + $0x38] sm:$0xff]  ;;  %v227_v41 = vld [vmem:[#allocation5 + $0x10] sm:$0xff] }
  0x4d   :  { %396 = vmatpush.msra.mxu3 %v297_v49  ;;  %437 = vmatpush.msrb.mxu2 %v294_v50  ;;  %v308_v40 = vld [vmem:[#allocation5 + $0x298] sm:$0xff]  ;;  %v303_v42 = vld [vmem:[#allocation5 + $0x270] sm:$0xff] }
  0x4e   :  { %418 = vmatpush.msrb.mxu0 %v226_v51  ;;  %450 = vmatpush.msrb.mxu1 %v259_v2  ;;  %v228_v43 = vld [vmem:[#allocation5 + $0x18] sm:$0xff]  ;;  %v299_v45 = vld [vmem:[#allocation5 + $0x250] sm:$0xff]  ;;  %v540_v2 = vld [vmem:[#allocation7 + $0x68] sm:$0xff] }
  0x4f   :  { %397 = vmatpush.msra.mxu3 %v293_v54  ;;  %438 = vmatpush.msrb.mxu2 %v290_v55  ;;  %v304_v44 = vld [vmem:[#allocation5 + $0x278] sm:$0xff]  ;;  %v295_v47 = vld [vmem:[#allocation5 + $0x230] sm:$0xff] }
  0x50   :  { %483 = vmatpush.msra.mxu0 %v288_v53  ;;  %451 = vmatpush.msrb.mxu1 %v255_v13  ;;  %v300_v46 = vld [vmem:[#allocation5 + $0x258] sm:$0xff]  ;;  %v291_v49 = vld [vmem:[#allocation5 + $0x210] sm:$0xff] }
  0x51   :  { %398 = vmatpush.msra.mxu3 %v289_v58  ;;  %503 = vmatpush.msra.mxu2 %v352_v60  ;;  %v296_v48 = vld [vmem:[#allocation5 + $0x238] sm:$0xff]  ;;  %v541_v62 = vld [vmem:[#allocation7 + $0x70] sm:$0xff] }
  0x52   :  { %484 = vmatpush.msra.mxu0 %v284_v57  ;;  %452 = vmatpush.msrb.mxu1 %v251_v17  ;;  %v292_v50 = vld [vmem:[#allocation5 + $0x218] sm:$0xff]  ;;  %v537_v13 = vld [vmem:[#allocation7 + $0x50] sm:$0xff] }
  0x53   :  { %463 = vmatpush.msrb.mxu3 %v351_v59  ;;  %504 = vmatpush.msra.mxu2 %v348_v0  ;;  %v129_v51 = vld [vmem:[%s991_s2] sm:$0x3] }
  0x54   :  { %485 = vmatpush.msra.mxu0 %v280_v61  ;;  %453 = vmatpush.msrb.mxu1 %v247_v21  ;;  %v131_v52 = vperm.slane %v129_v51, 0  ;;  %v132_v57 = vperm.slane %v129_v51, 1  ;;  %v542_v59 = vld [vmem:[#allocation7 + $0x78] sm:$0xff]  ;;  %v551_v21 = vld [vmem:[#allocation7 + $0xc0] sm:$0xff]  ;;  %v580_v51 = vld [vmem:[#allocation7 + $0x1a8] sm:$0xff] }
  0x55   :  { %464 = vmatpush.msrb.mxu3 %v347_v63  ;;  %505 = vmatpush.msra.mxu2 %v344_v4  ;;  %v574_v60 = vld [vmem:[#allocation7 + $0x178] sm:$0xff]  ;;  %v573_v63 = vld [vmem:[#allocation7 + $0x170] sm:$0xff] }
  0x56   :  { %486 = vmatpush.msra.mxu0 %v276_v1  ;;  %454 = vmatpush.msrb.mxu1 %v243_v25  ;;  %v554_v17 = vld [vmem:[#allocation7 + $0xd8] sm:$0xff] }
  0x57   :  { %465 = vmatpush.msrb.mxu3 %v343_v3  ;;  %506 = vmatpush.msra.mxu2 %v340_v7  ;;  %v572_v3 = vld [vmem:[#allocation7 + $0x168] sm:$0xff]  ;;  %v539_v7 = vld [vmem:[#allocation7 + $0x60] sm:$0xff]  ;;  %v550_v25 = vld [vmem:[#allocation7 + $0xb8] sm:$0xff] }
  0x58   :  { %487 = vmatpush.msra.mxu0 %v272_v5  ;;  %455 = vmatpush.msrb.mxu1 %v239_v29  ;;  %v549_v29 = vld [vmem:[#allocation7 + $0xb0] sm:$0xff] }
  0x59   :  { %466 = vmatpush.msrb.mxu3 %v339_v6  ;;  %507 = vmatpush.msra.mxu2 %v336_v10  ;;  %v558_v6 = vld [vmem:[#allocation7 + $0xf8] sm:$0xff] }
  0x5a   :  { %488 = vmatpush.msra.mxu0 %v268_v8  ;;  %456 = vmatpush.msrb.mxu1 %v235_v33  ;;  %v590_v8 = vld [vmem:[#allocation7 + $0x1f8] sm:$0xff]  ;;  %v548_v33 = vld [vmem:[#allocation7 + $0xa8] sm:$0xff] }
  0x5b   :  { %467 = vmatpush.msrb.mxu3 %v335_v9  ;;  %508 = vmatpush.msra.mxu2 %v332_v16  ;;  %v557_v9 = vld [vmem:[#allocation7 + $0xf0] sm:$0xff]  ;;  %v538_v10 = vld [vmem:[#allocation7 + $0x58] sm:$0xff]  ;;  %v536_v16 = vld [vmem:[#allocation7 + $0x48] sm:$0xff] }
  0x5c   :  { %489 = vmatpush.msra.mxu0 %v264_v11  ;;  %457 = vmatpush.msrb.mxu1 %v231_v37  ;;  %v589_v11 = vld [vmem:[#allocation7 + $0x1f0] sm:$0xff]  ;;  %v547_v37 = vld [vmem:[#allocation7 + $0xa0] sm:$0xff] }
  0x5d   :  { %468 = vmatpush.msrb.mxu3 %v331_v14  ;;  %509 = vmatpush.msra.mxu2 %v328_v20  ;;  %v588_v14 = vld [vmem:[#allocation7 + $0x1e8] sm:$0xff]  ;;  %v535_v20 = vld [vmem:[#allocation7 + $0x40] sm:$0xff] }
  0x5e   :  { %490 = vmatpush.msra.mxu0 %v260_v12  ;;  %458 = vmatpush.msrb.mxu1 %v227_v41  ;;  %v556_v12 = vld [vmem:[#allocation7 + $0xe8] sm:$0xff]  ;;  %v546_v41 = vld [vmem:[#allocation7 + $0x98] sm:$0xff] }
  0x5f   :  { %469 = vmatpush.msrb.mxu3 %v327_v18  ;;  %510 = vmatpush.msra.mxu2 %v324_v24  ;;  %v553_v18 = vld [vmem:[#allocation7 + $0xd0] sm:$0xff]  ;;  %v534_v24 = vld [vmem:[#allocation7 + $0x38] sm:$0xff] }
  0x60   :  { %491 = vmatpush.msra.mxu0 %v256_v15  ;;  %v555_v15 = vld [vmem:[#allocation7 + $0xe0] sm:$0xff] }
  0x61   :  { %470 = vmatpush.msrb.mxu3 %v323_v22  ;;  %511 = vmatpush.msra.mxu2 %v320_v28  ;;  %v571_v22 = vld [vmem:[#allocation7 + $0x160] sm:$0xff]  ;;  %v533_v28 = vld [vmem:[#allocation7 + $0x30] sm:$0xff] }
  0x62   :  { %492 = vmatpush.msra.mxu0 %v252_v19  ;;  %v552_v19 = vld [vmem:[#allocation7 + $0xc8] sm:$0xff] }
  0x63   :  { %471 = vmatpush.msrb.mxu3 %v319_v26  ;;  %512 = vmatpush.msra.mxu2 %v316_v32  ;;  %v570_v26 = vld [vmem:[#allocation7 + $0x158] sm:$0xff]  ;;  %v532_v32 = vld [vmem:[#allocation7 + $0x28] sm:$0xff] }
  0x64   :  { %493 = vmatpush.msra.mxu0 %v248_v23  ;;  %v587_v23 = vld [vmem:[#allocation7 + $0x1e0] sm:$0xff] }
  0x65   :  { %472 = vmatpush.msrb.mxu3 %v315_v30  ;;  %513 = vmatpush.msra.mxu2 %v312_v36  ;;  %v569_v30 = vld [vmem:[#allocation7 + $0x150] sm:$0xff]  ;;  %v531_v36 = vld [vmem:[#allocation7 + $0x20] sm:$0xff] }
  0x66   :  { %494 = vmatpush.msra.mxu0 %v244_v27  ;;  %v586_v27 = vld [vmem:[#allocation7 + $0x1d8] sm:$0xff] }
  0x67   :  { %473 = vmatpush.msrb.mxu3 %v311_v34  ;;  %514 = vmatpush.msra.mxu2 %v308_v40  ;;  %v568_v34 = vld [vmem:[#allocation7 + $0x148] sm:$0xff]  ;;  %v530_v40 = vld [vmem:[#allocation7 + $0x18] sm:$0xff] }
  0x68   :  { %495 = vmatpush.msra.mxu0 %v240_v31  ;;  %v585_v31 = vld [vmem:[#allocation7 + $0x1d0] sm:$0xff] }
  0x69   :  { %474 = vmatpush.msrb.mxu3 %v307_v38  ;;  %515 = vmatpush.msra.mxu2 %v304_v44  ;;  %v567_v38 = vld [vmem:[#allocation7 + $0x140] sm:$0xff]  ;;  %v529_v44 = vld [vmem:[#allocation7 + $0x10] sm:$0xff] }
  0x6a   :  { %496 = vmatpush.msra.mxu0 %v236_v35  ;;  %v584_v35 = vld [vmem:[#allocation7 + $0x1c8] sm:$0xff] }
  0x6b   :  { %475 = vmatpush.msrb.mxu3 %v303_v42  ;;  %516 = vmatpush.msra.mxu2 %v300_v46  ;;  %v566_v42 = vld [vmem:[#allocation7 + $0x138] sm:$0xff]  ;;  %v565_v46 = vld [vmem:[#allocation7 + $0x130] sm:$0xff] }
  0x6c   :  { %497 = vmatpush.msra.mxu0 %v232_v39  ;;  %v583_v39 = vld [vmem:[#allocation7 + $0x1c0] sm:$0xff] }
  0x6d   :  { %476 = vmatpush.msrb.mxu3 %v299_v45  ;;  %517 = vmatpush.msra.mxu2 %v296_v48  ;;  %v545_v45 = vld [vmem:[#allocation7 + $0x90] sm:$0xff]  ;;  %v528_v48 = vld [vmem:[#allocation7 + $0x8] sm:$0xff] }
  0x6e   :  { %498 = vmatpush.msra.mxu0 %v228_v43  ;;  %v582_v43 = vld [vmem:[#allocation7 + $0x1b8] sm:$0xff] }
  0x6f   :  { %477 = vmatpush.msrb.mxu3 %v295_v47  ;;  %518 = vmatpush.msra.mxu2 %v292_v50  ;;  %v581_v47 = vld [vmem:[#allocation7 + $0x1b0] sm:$0xff]  ;;  %v564_v50 = vld [vmem:[#allocation7 + $0x128] sm:$0xff] }
  0x71   :  { %478 = vmatpush.msrb.mxu3 %v291_v49  ;;  %v544_v49 = vld [vmem:[#allocation7 + $0x88] sm:$0xff] }
  0xac   :  { %v160_v53 = vpop.f32.mrf.mxu0  ;;  %v180_v54 = vpop.f32.mrf.mxu3 }
  0xad   :  { %v161_v55 = vadd.f32 %v160_v53, %v131_v52  ;;  %v527_v52 = vld [vmem:[#allocation7] sm:$0xff] }
  0xae   :  { %v543_v53 = vld [vmem:[#allocation7 + $0x80] sm:$0xff] }
  0xaf   :  { %v181_v56 = vadd.f32 %v180_v54, %v161_v55  ;;  %v563_v54 = vld [vmem:[#allocation7 + $0x120] sm:$0xff] }
  0xb0   :  { %v579_v55 = vld [vmem:[#allocation7 + $0x1a0] sm:$0xff] }
  0xb1   :  { %v223_v58 = vmax.f32 %v181_v56, 0.0  ;;  %v562_v56 = vld [vmem:[#allocation7 + $0x118] sm:$0xff] }
  0xb3   :  { %v200_v61 = vpop.f32.mrf.mxu2  ;;  %379 = vmatmul.f32.vlgmr.msra.gmra.mxu1 %v223_v58  ;;  %419 = vmatmul.f32.vlgmr.msrb.gmra.mxu0 %v223_v58 }
  0xb4   :  { %v201_v0 = vadd.f32 %v200_v61, %v132_v57  ;;  %595 = vmatpush.msra.mxu1 %v542_v59  ;;  %635 = vmatpush.msrb.mxu0 %v574_v60  ;;  %v578_v57 = vld [vmem:[#allocation7 + $0x198] sm:$0xff]  ;;  %v577_v59 = vld [vmem:[#allocation7 + $0x190] sm:$0xff]  ;;  %v560_v60 = vld [vmem:[#allocation7 + $0x108] sm:$0xff] }
  0xb5   :  { %v220_v1 = vpop.f32.mrf.mxu3  ;;  %v576_v61 = vld [vmem:[#allocation7 + $0x188] sm:$0xff] }
  0xb6   :  { %v221_v4 = vadd.f32 %v220_v1, %v201_v0  ;;  %596 = vmatpush.msra.mxu1 %v541_v62  ;;  %636 = vmatpush.msrb.mxu0 %v573_v63  ;;  %v559_v62 = vld [vmem:[#allocation7 + $0x100] sm:$0xff]  ;;  %v691_v0 = vld [vmem:[%s996_s7 + $0x78] sm:$0xff]  ;;  %v690_v1 = vld [vmem:[%s996_s7 + $0x70] sm:$0xff] }
  0xb7   :  { %v575_v63 = vld [vmem:[#allocation7 + $0x180] sm:$0xff] }
  0xb8   :  { %v224_v5 = vmax.f32 %v221_v4, 0.0  ;;  %597 = vmatpush.msra.mxu1 %v540_v2  ;;  %637 = vmatpush.msrb.mxu0 %v572_v3  ;;  %v689_v2 = vld [vmem:[%s996_s7 + $0x68] sm:$0xff]  ;;  %v688_v3 = vld [vmem:[%s996_s7 + $0x60] sm:$0xff]  ;;  %v687_v4 = vld [vmem:[%s996_s7 + $0x58] sm:$0xff] }
  0xba   :  { %399 = vmatmul.f32.vlgmr.msra.gmra.mxu3 %v224_v5  ;;  %439 = vmatmul.f32.vlgmr.msrb.gmra.mxu2 %v224_v5 }
  0xbb   :  { %459 = vmatmul.f32.vlgmr.msrb.gmra.mxu1 %v223_v58  ;;  %499 = vmatmul.f32.vlgmr.msra.gmra.mxu0 %v223_v58  ;;  %v561_v58 = vld [vmem:[#allocation7 + $0x110] sm:$0xff] }
  0xbc   :  { %615 = vmatpush.msra.mxu3 %v558_v6  ;;  %598 = vmatpush.msra.mxu1 %v539_v7  ;;  %v353_v6 = vld [vmem:[%s993_s4] sm:$0xf] }
  0xbd   :  { %655 = vmatpush.msrb.mxu2 %v590_v8  ;;  %638 = vmatpush.msrb.mxu0 %v571_v22 }
  0xbe   :  { %616 = vmatpush.msra.mxu3 %v557_v9  ;;  %599 = vmatpush.msra.mxu1 %v538_v10  ;;  %v355_v9 = vperm.slane %v353_v6, 0  ;;  %v356_v10 = vperm.slane %v353_v6, 1 }
  0xbf   :  { %656 = vmatpush.msrb.mxu2 %v589_v11  ;;  %639 = vmatpush.msrb.mxu0 %v570_v26 }
  0xc0   :  { %617 = vmatpush.msra.mxu3 %v556_v12  ;;  %600 = vmatpush.msra.mxu1 %v537_v13 }
  0xc1   :  { %657 = vmatpush.msrb.mxu2 %v588_v14  ;;  %640 = vmatpush.msrb.mxu0 %v569_v30 }
  0xc2   :  { %479 = vmatmul.f32.vlgmr.msrb.gmra.mxu3 %v224_v5  ;;  %519 = vmatmul.f32.vlgmr.msra.gmra.mxu2 %v224_v5  ;;  %v686_v5 = vld [vmem:[%s996_s7 + $0x50] sm:$0xff] }
  0xc3   :  { %618 = vmatpush.msra.mxu3 %v555_v15  ;;  %601 = vmatpush.msra.mxu1 %v536_v16 }
  0xc4   :  { %658 = vmatpush.msrb.mxu2 %v587_v23  ;;  %641 = vmatpush.msrb.mxu0 %v568_v34  ;;  %v682_v34 = vld [vmem:[%s996_s7 + $0x30] sm:$0xff] }
  0xc5   :  { %619 = vmatpush.msra.mxu3 %v554_v17  ;;  %602 = vmatpush.msra.mxu1 %v535_v20  ;;  %v357_v17 = vperm.slane %v353_v6, 2 }
  0xc6   :  { %659 = vmatpush.msrb.mxu2 %v586_v27  ;;  %642 = vmatpush.msrb.mxu0 %v567_v38  ;;  %v678_v38 = vld [vmem:[%s996_s7 + $0x10] sm:$0xff] }
  0xc7   :  { %620 = vmatpush.msra.mxu3 %v553_v18  ;;  %603 = vmatpush.msra.mxu1 %v534_v24  ;;  %v358_v18 = vperm.slane %v353_v6, 3 }
  0xc8   :  { %660 = vmatpush.msrb.mxu2 %v585_v31  ;;  %643 = vmatpush.msrb.mxu0 %v566_v42  ;;  %v685_v31 = vld [vmem:[%s996_s7 + $0x48] sm:$0xff] }
  0xc9   :  { %621 = vmatpush.msra.mxu3 %v552_v19  ;;  %604 = vmatpush.msra.mxu1 %v533_v28 }
  0xca   :  { %661 = vmatpush.msrb.mxu2 %v584_v35  ;;  %644 = vmatpush.msrb.mxu0 %v565_v46  ;;  %v681_v35 = vld [vmem:[%s996_s7 + $0x28] sm:$0xff] }
  0xcb   :  { %622 = vmatpush.msra.mxu3 %v551_v21  ;;  %605 = vmatpush.msra.mxu1 %v532_v32  ;;  %v684_v32 = vld [vmem:[%s996_s7 + $0x40] sm:$0xff] }
  0xcc   :  { %662 = vmatpush.msrb.mxu2 %v583_v39  ;;  %645 = vmatpush.msrb.mxu0 %v564_v50  ;;  %v677_v39 = vld [vmem:[%s996_s7 + $0x8] sm:$0xff] }
  0xcd   :  { %623 = vmatpush.msra.mxu3 %v550_v25  ;;  %606 = vmatpush.msra.mxu1 %v531_v36  ;;  %v680_v36 = vld [vmem:[%s996_s7 + $0x20] sm:$0xff] }
  0xce   :  { %663 = vmatpush.msrb.mxu2 %v582_v43  ;;  %646 = vmatpush.msrb.mxu0 %v563_v54 }
  0xcf   :  { %624 = vmatpush.msra.mxu3 %v549_v29  ;;  %607 = vmatpush.msra.mxu1 %v530_v40  ;;  %v676_v40 = vld [vmem:[%s996_s7] sm:$0xff] }
  0xd0   :  { %664 = vmatpush.msrb.mxu2 %v581_v47  ;;  %647 = vmatpush.msrb.mxu0 %v562_v56 }
  0xd1   :  { %625 = vmatpush.msra.mxu3 %v548_v33  ;;  %608 = vmatpush.msra.mxu1 %v529_v44  ;;  %v683_v33 = vld [vmem:[%s996_s7 + $0x38] sm:$0xff] }
  0xd2   :  { %665 = vmatpush.msrb.mxu2 %v580_v51  ;;  %648 = vmatpush.msrb.mxu0 %v561_v58  ;;  %v749_v51 = vld [vmem:[%s997_s8] ss:$0 sm:$0xff] }
  0xd3   :  { %626 = vmatpush.msra.mxu3 %v547_v37  ;;  %609 = vmatpush.msra.mxu1 %v528_v48  ;;  %v679_v37 = vld [vmem:[%s996_s7 + $0x18] sm:$0xff]  ;;  %s861_s7 = smov [#allocation8]  }
  0xd4   :  { %666 = vmatpush.msrb.mxu2 %v579_v55  ;;  %649 = vmatpush.msrb.mxu0 %v560_v60  ;;  %s723_s19 = sshll.u32 %s861_s7, 4  ;;  %s724_s19 = int_to_ptr.vmem [resolvable:$true] %s723_s19 }
  0xd5   :  { %627 = vmatpush.msra.mxu3 %v546_v41  ;;  %610 = vmatpush.msra.mxu1 %v527_v52  ;;  %v748_v41 = vld [vmem:[%s995_s6] ss:$0 sm:$0xff]  ;;  %s725_s6 = sshll.u32 %s998_s9, 4  ;;  %s726_s6 = int_to_ptr.hbm [resolvable:$true] %s725_s6 }
  0xd6   :  { %667 = vmatpush.msrb.mxu2 %v578_v57  ;;  %650 = vmatpush.msrb.mxu0 %v559_v62 }
  0xd7   :  { %628 = vmatpush.msra.mxu3 %v545_v45  ;;  %696 = vmatpush.msrb.mxu1 %v691_v0 }
  0xd8   :  { %668 = vmatpush.msrb.mxu2 %v577_v59 }
  0xd9   :  { %629 = vmatpush.msra.mxu3 %v544_v49  ;;  %697 = vmatpush.msrb.mxu1 %v690_v1 }
  0xda   :  { %669 = vmatpush.msrb.mxu2 %v576_v61 }
  0xdb   :  { %630 = vmatpush.msra.mxu3 %v543_v53  ;;  %698 = vmatpush.msrb.mxu1 %v689_v2 }
  0xdc   :  { %670 = vmatpush.msrb.mxu2 %v575_v63 }
  0xdd   :  { %699 = vmatpush.msrb.mxu1 %v688_v3 }
  0xdf   :  { %700 = vmatpush.msrb.mxu1 %v687_v4 }
  0xe1   :  { %701 = vmatpush.msrb.mxu1 %v686_v5 }
  0xe3   :  { %702 = vmatpush.msrb.mxu1 %v685_v31 }
  0xe5   :  { %703 = vmatpush.msrb.mxu1 %v684_v32 }
  0xe7   :  { %704 = vmatpush.msrb.mxu1 %v683_v33 }
  0xe9   :  { %705 = vmatpush.msrb.mxu1 %v682_v34 }
  0xeb   :  { %706 = vmatpush.msrb.mxu1 %v681_v35 }
  0xed   :  { %707 = vmatpush.msrb.mxu1 %v680_v36 }
  0xef   :  { %708 = vmatpush.msrb.mxu1 %v679_v37 }
  0xf1   :  { %709 = vmatpush.msrb.mxu1 %v678_v38 }
  0xf3   :  { %710 = vmatpush.msrb.mxu1 %v677_v39 }
  0xf5   :  { %711 = vmatpush.msrb.mxu1 %v676_v40 }
 0x130   :  { %v380_v7 = vpop.f32.mrf.mxu1  ;;  %v420_v8 = vpop.f32.mrf.mxu0 }
 0x131   :  { %v381_v11 = vadd.f32 %v380_v7, %v355_v9  ;;  %v421_v12 = vadd.f32 %v420_v8, %v356_v10 }
 0x138   :  { %v460_v21 = vpop.f32.mrf.mxu1  ;;  %v500_v22 = vpop.f32.mrf.mxu0 }
 0x139   :  { %v461_v23 = vadd.f32 %v460_v21, %v357_v17  ;;  %v501_v24 = vadd.f32 %v500_v22, %v358_v18 }
 0x13d   :  { %v400_v13 = vpop.f32.mrf.mxu3  ;;  %v440_v14 = vpop.f32.mrf.mxu2 }
 0x13e   :  { %v401_v15 = vadd.f32 %v400_v13, %v381_v11  ;;  %v441_v16 = vadd.f32 %v440_v14, %v421_v12 }
 0x140   :  { %v523_v19 = vmax.f32 %v401_v15, 0.0  ;;  %v524_v20 = vmax.f32 %v441_v16, 0.0 }
 0x142   :  { %611 = vmatmul.f32.vlgmr.msra.gmra.mxu1 %v523_v19  ;;  %631 = vmatmul.f32.vlgmr.msra.gmra.mxu3 %v524_v20 }
 0x145   :  { %v480_v25 = vpop.f32.mrf.mxu3  ;;  %v520_v26 = vpop.f32.mrf.mxu2 }
 0x146   :  { %v481_v27 = vadd.f32 %v480_v25, %v461_v23  ;;  %v521_v28 = vadd.f32 %v520_v26, %v501_v24 }
 0x148   :  { %v525_v29 = vmax.f32 %v481_v27, 0.0  ;;  %v526_v30 = vmax.f32 %v521_v28, 0.0 }
 0x14a   :  { %651 = vmatmul.f32.vlgmr.msrb.gmra.mxu0 %v525_v29  ;;  %671 = vmatmul.f32.vlgmr.msrb.gmra.mxu2 %v526_v30 }
 0x1bf   :  { %v612_v42 = vpop.f32.mrf.mxu1 }
 0x1c0   :  { %v613_v44 = vadd.f32 %v748_v41, %v612_v42 }
 0x1c5   :  { %v632_v43 = vpop.f32.mrf.mxu3 }
 0x1c6   :  { %v633_v45 = vadd.f32 %v632_v43, %v613_v44 }
 0x1c7   :  { %v652_v46 = vpop.f32.mrf.mxu0 }
 0x1c8   :  { %v653_v47 = vadd.f32 %v652_v46, %v633_v45 }
 0x1cd   :  { %v672_v48 = vpop.f32.mrf.mxu2 }
 0x1ce   :  { %v673_v49 = vadd.f32 %v672_v48, %v653_v47 }
 0x1d0   :  { %v675_v50 = vmax.f32 %v673_v49, 0.0 }
 0x1d2   :  { %712 = vmatmul.f32.vlgmr.msrb.gmra.mxu1 %v675_v50 }
 0x24f   :  { %v713_v52 = vpop.f32.mrf.mxu1 }
 0x250   :  { %v714_v53 = vadd.f32 %v749_v51, %v713_v52 }
 0x252   :  { %717 = vst.msk [vmem:[#allocation8] sm:$0x3] %vm716_vm1, %v714_v53 }
 0x253   :  { %728 = dma.vmem_to_hbm [thread:$0]  %s724_s19, 32, %s726_s6, [#allocation4]  }
 0x254   :  { %850 = dma.done.wait [#allocation4], 32  }
 0x255   :  { %851 = vsyncadd [#allocation4], 4294967264 }
 0x256   :  { %733 = vsyncpa [#allocation3], 1 }
 0x257   :  { %734 = vsyncpa [#allocation6], 1 }
 0x258   :  { %735 = vsyncpa [#allocation4], 1 }

</bundles_post_ra>
